<compile_context>
chip_gen: v5e
topology: v5e:2x2
jax: 0.10.0
libtpu: 0.0.40
codegen_flags: <defaults>
</compile_context>

<pallas_src>
import jax
import jax.numpy as jnp
from jax.experimental import pallas as pl
from jax.experimental.pallas import tpu as pltpu


# ----------------------------------------------------------------------------- kernel
def _copy_kernel(x_ref, o_ref):
    # Straight VMEM tile copy (DMA bound; lane-dense tiles => unmasked vst).
    o_ref[...] = x_ref[...]


# ------------------------------------------------------------------- generation sizing
def _vmem_budget():
    """Returns (tile_target_bytes, vmem_limit_bytes_or_None), generation-aware."""
    try:
        cap = pltpu.get_tpu_info().vmem_capacity_bytes
    except Exception:
        cap = 64 << 20  # conservative: assume the smallest VMEM (v7x-like, 64 MiB)
    if cap >= (96 << 20):
        # v5e / v6e: 128 MiB physical.  8 MiB tiles -> 32 MiB double-buffered in+out
        # working set; raise the scoped default (16/32 MiB) to 48 MiB (headroom for
        # Mosaic internal scratch, still well under physical).
        return 8 << 20, 48 << 20
    # v7x: 64 MiB physical.  4 MiB tiles -> 16 MiB working set, already covered by the
    # 32 MiB scoped default -> no override (never set the limit to full physical VMEM).
    return 4 << 20, None


# ------------------------------------------------------------------------- tiling util
def _choose_lane_width(n: int) -> int:
    """Largest C = 128*k (C <= 32768) that divides n; 0 if n is not a multiple of 128."""
    best = 0
    c = 128
    while c <= min(n, 32768):
        if n % c == 0:
            best = c
        c += 128
    return best


def _tile_rows_for(R: int, C: int, itemsize: int, target_bytes: int) -> int:
    """Rows per block: ~target_bytes tiles, dtype-aware sublane multiple, and >=2 grid
    steps whenever the array permits so the 'parallel' row axis can shard across
    v7x's two TensorCores."""
    # Native packed sublane tile: 8 rows f32, 16 bf16/f16, 32 int8/fp8.
    sub = max(8, (8 * 4) // max(1, itemsize))
    rows = max(1, target_bytes // max(1, C * itemsize))
    if rows >= R:
        # Whole array fits in one tile.  Split into >=2 legal sub-blocks when possible
        # so both TCs get work on v7x (no-op on v5e/v6e: single TC).
        if R >= 2 * sub:
            return ((R // 2) // sub) * sub
        return R  # full extent along rows -> always a legal block
    rows = max(sub, (rows // sub) * sub)
    return min(rows, R)


def _pallas_copy_2d(x2d, tile_rows: int, vmem_limit_bytes):
    R, C = x2d.shape
    grid_r = pl.cdiv(R, tile_rows)
    return pl.pallas_call(
        _copy_kernel,
        out_shape=jax.ShapeDtypeStruct((R, C), x2d.dtype),
        grid=(grid_r,),
        # Default depth-2 pipelining (do NOT deepen: pure HBM-bandwidth bound).
        in_specs=[pl.BlockSpec((tile_rows, C), lambda i: (i, 0))],
        out_specs=pl.BlockSpec((tile_rows, C), lambda i: (i, 0)),
        compiler_params=pltpu.CompilerParams(
            # Row axis is independent -> shard across the 2 TCs on v7x.
            dimension_semantics=("parallel",),
            vmem_limit_bytes=vmem_limit_bytes,
        ),
    )(x2d)


# ----------------------------------------------------------------------------- wrappers
def identity_forward(*args):
    """Pallas-equivalent of Identity.forward(*args) -- the production path.

    Identity is pure pass-through, so the optimal implementation emits NO kernel:
    no HBM read, no HBM write, O(1) regardless of tensor size.  This is also the
    correct answer when the caller could donate the buffer (beats any aliased copy).
    """
    return args[-1]


def identity_forward_pallas(*args):
    """Same semantics, routed through an explicit (optimized) Pallas copy kernel.

    Only useful when a materialized copy is genuinely required; otherwise prefer
    identity_forward (zero HBM traffic).
    """
    x = args[-1]
    orig_shape = x.shape
    n = int(x.size)
    if n == 0:
        return x

    flat = x.reshape(-1)
    padded = False
    if n % 128 != 0:
        # Pad to the next multiple of 1024 (8*128) so the copy stays on the
        # lane-dense, tiled, double-buffered path (never one unbounded block).
        n_pad = ((n + 1023) // 1024) * 1024
        flat = jnp.pad(flat, (0, n_pad - n))
        padded = True
    n_work = flat.shape[0]

    lane_c = _choose_lane_width(n_work)  # >= 128 guaranteed after padding
    x2d = flat.reshape(n_work // lane_c, lane_c)

    target_bytes, vmem_limit = _vmem_budget()
    R, C = x2d.shape
    tile_rows = _tile_rows_for(R, C, x2d.dtype.itemsize, target_bytes)
    y2d = _pallas_copy_2d(x2d, tile_rows, vmem_limit)

    y_flat = y2d.reshape(-1)
    if padded:
        y_flat = y_flat[:n]
    return y_flat.reshape(orig_shape)


# --------------------------------------------------------------------------------- main
if __name__ == "__main__":
    key = jax.random.PRNGKey(0)
    # Identity has no parameters (its __init__ ignores all args), nothing to init.
    x = jax.random.normal(key, (2, 4, 16, 16), dtype=jnp.float32)
    unused = jnp.zeros((3,), dtype=jnp.float32)  # extra (ignored) leading arg

    # Fast path: the recommended production path (no kernel at all).
    y_fast = jax.block_until_ready(identity_forward(unused, x))
    assert y_fast.shape == x.shape and y_fast.dtype == x.dtype
    assert bool(jnp.array_equal(y_fast, x))

    # Pallas path: optimized copy kernel compiles and runs cleanly on TPU.
    y = jax.block_until_ready(identity_forward_pallas(unused, x))
    assert y.shape == x.shape and y.dtype == x.dtype
    assert bool(jnp.array_equal(y, x))

    # Padded path: size not a multiple of 128 (exercises jnp.pad + slice-back).
    x_odd = jax.random.normal(jax.random.PRNGKey(1), (3, 5, 7), dtype=jnp.float32)
    y_odd = jax.block_until_ready(identity_forward_pallas(x_odd))
    assert y_odd.shape == x_odd.shape and bool(jnp.array_equal(y_odd, x_odd))

    # Packed dtype path: exercises dtype-aware sublane rounding (bf16 -> 16 rows).
    x_bf16 = x.astype(jnp.bfloat16)
    y_bf16 = jax.block_until_ready(identity_forward_pallas(x_bf16))
    assert y_bf16.dtype == jnp.bfloat16 and bool(jnp.array_equal(y_bf16, x_bf16))

    print("KERNEL_OK")
</pallas_src>

<mosaic_0001>
module attributes {stable_mosaic.version = 11 : i64} {
  func.func @_copy_kernel(%arg0: i32, %arg1: memref<1x2048xf32, #tpu.memory_space<vmem>>, %arg2: memref<1x2048xf32, #tpu.memory_space<vmem>>) attributes {dimension_semantics = [#tpu.dimension_semantics<parallel>], iteration_bounds = array<i64: 1>, scalar_prefetch = 0 : i64, scratch_operands = 0 : i64, tpu.core_type = #tpu.core_type<tc>, window_params = [{transform_indices = @transform_0, window_bounds = array<i64: 1, 2048>}, {transform_indices = @transform_1, window_bounds = array<i64: 1, 2048>}]} {
    %c0 = arith.constant 0 : index
    %c0_0 = arith.constant 0 : index
    %0 = vector.load %arg1[%c0, %c0_0] : memref<1x2048xf32, #tpu.memory_space<vmem>>, vector<1x2048xf32>
    %c0_1 = arith.constant 0 : index
    %c0_2 = arith.constant 0 : index
    %1 = vector.load %arg2[%c0_1, %c0_2] : memref<1x2048xf32, #tpu.memory_space<vmem>>, vector<1x2048xf32>
    tpu.vector_store %arg2[%c0_1, %c0_2], %0 {strides = array<i32>} : memref<1x2048xf32, #tpu.memory_space<vmem>>, vector<1x2048xf32>,
    return
  }
  func.func @transform_0(%arg0: i32) -> (i32, i32) {
    %c0_i32 = arith.constant 0 : i32
    %c0_i32_0 = arith.constant 0 : i32
    return %arg0, %c0_i32 : i32, i32
  }
  func.func @transform_1(%arg0: i32) -> (i32, i32) {
    %c0_i32 = arith.constant 0 : i32
    %c0_i32_0 = arith.constant 0 : i32
    return %arg0, %c0_i32 : i32, i32
  }
}

</mosaic_0001>

<bundles_post_ra>
// kernel: tpu_custom_call.1
= control target key start
LH: loop header
LB: loop body
LE: loop exit
PB: predicated region body
PF: predicated region fallthrough
CT: control target
= control target key end

     0   :  { %6 = vsyncpa [#allocation3], 0  ;;  %s116_s0 = inlined_call_operand.hbm [shape: f32[1,2048], index: 0, kind: input, shape index: {}]   ;;  %s117_s1 = inlined_call_operand.hbm [shape: f32[1,2048], index: 1, kind: output, shape index: {}]  }
   0x1   :  { %7 = vsyncpa [#allocation4], 0  ;;  %s13_s8 = sshll.u32 %s116_s0, 4  ;;  %s98_s9 = smov [#allocation2]   ;;  %s14_s8 = int_to_ptr.hbm [resolvable:$true] %s13_s8 }
   0x2   :  { %s15_s10 = sshll.u32 %s98_s9, 4  ;;  %s16_s10 = int_to_ptr.vmem [resolvable:$true] %s15_s10 }
   0x3   :  { %18 = dma.hbm_to_vmem [thread:$0]  %s14_s8, 256, %s16_s10, [#allocation3]  }
   0x4   :  { %94 = dma.done.wait [#allocation3], 256  }
   0x5   :  { %95 = vsyncadd [#allocation3], 4294967040  ;;  %s99_s11 = smov [#allocation5]   ;;  %s34_s15 = sshll.u32 %s117_s1, 4  ;;  %v23_v0 = vld [vmem:[#allocation2] sm:$0xff]  ;;  %v24_v1 = vld [vmem:[#allocation2 + $0x8] sm:$0xff]  ;;  %s35_s15 = int_to_ptr.hbm [resolvable:$true] %s34_s15 }
   0x6   :  { %s32_s12 = sshll.u32 %s99_s11, 4  ;;  %25 = vst [vmem:[#allocation5] sm:$0xff] %v23_v0  ;;  %s33_s12 = int_to_ptr.vmem [resolvable:$true] %s32_s12 }
   0x7   :  { %26 = vst [vmem:[#allocation5 + $0x8] sm:$0xff] %v24_v1 }
   0x8   :  { %37 = dma.vmem_to_hbm [thread:$0]  %s33_s12, 256, %s35_s15, [#allocation4]  }
   0x9   :  { %96 = dma.done.wait [#allocation4], 256  }
   0xa   :  { %97 = vsyncadd [#allocation4], 4294967040 }
   0xb   :  { %42 = vsyncpa [#allocation3], 1 }
   0xc   :  { %43 = vsyncpa [#allocation4], 1 }

</bundles_post_ra>
